<compile_context>
chip_gen: v7x
topology: tpu7x:2x2x1
jax: 0.10.0
libtpu: 0.0.40
codegen_flags: <defaults>
</compile_context>

<pallas_src>
import jax
import jax.numpy as jnp
from jax.experimental import pallas as pl
from jax.experimental.pallas import tpu as pltpu

LANE = 128  # lane width: pad feature / node dims to multiples of this


def _round_up(x, m):
    return ((x + m - 1) // m) * m


# ----------------------------- Pallas kernel -------------------------------

def _fused_gcn_kernel(a_ref, x_ref,
                      w1_ref, b1_ref,
                      w2_ref, b2_ref,
                      w3_ref, b3_ref,
                      w4_ref, b4_ref,
                      o_ref):
    """Entire NodeGCNNet forward, everything VMEM-resident.

    a_ref : (Np, Np)  bf16  normalized adjacency (loaded once, reused 3x)
    x_ref : (Np, Fp)  bf16  node features
    w*_ref: bf16 weights, b*_ref: f32 biases (1, Fo_pad)
    o_ref : (Np, OUTp) f32
    """
    a = a_ref[...]          # stays in VMEM/vregs across all three layers
    h = x_ref[...]

    def gcn_layer(h_bf16, w_ref, b_ref):
        # (A @ H) @ W : N^2 contraction at width F_in (cheaper than A @ (H @ W)
        # whenever F_out >= F_in, which holds for conv1/2/3 here).
        agg = jnp.dot(a, h_bf16, preferred_element_type=jnp.float32)
        z = jnp.dot(agg.astype(jnp.bfloat16), w_ref[...],
                    preferred_element_type=jnp.float32)
        z = z + b_ref[...]                       # f32 epilogue
        return jnp.maximum(z, 0.0).astype(jnp.bfloat16)

    h = gcn_layer(h, w1_ref, b1_ref)             # conv1 + relu
    h = gcn_layer(h, w2_ref, b2_ref)             # conv2 + relu
    h = gcn_layer(h, w3_ref, b3_ref)             # conv3 + relu

    out = jnp.dot(h, w4_ref[...], preferred_element_type=jnp.float32)
    out = out + b4_ref[...]                      # fc_g1
    # dropout(p=0.2) -> identity in eval mode
    o_ref[...] = out.astype(o_ref.dtype)


# ------------------------------ wrappers ------------------------------------

def _pad2(x, rows, cols, dtype):
    """Zero-pad a 2-D array to (rows, cols) and cast to dtype (exact for this net)."""
    r, c = x.shape
    out = jnp.zeros((rows, cols), dtype)
    return out.at[:r, :c].set(x.astype(dtype))


def build_norm_adj(edge_index, num_nodes):
    """Dense D^{-1/2} (A + I) D^{-1/2}, matching PyG gcn_norm with self loops.

    edge_index[0] = source nodes (messages flow source -> target),
    edge_index[1] = target nodes; A[target, source] accumulates edge weights
    (duplicate edges sum, same as PyG's scatter_add).
    """
    src = edge_index[0]
    tgt = edge_index[1]
    a = jnp.zeros((num_nodes, num_nodes), jnp.float32)
    a = a.at[tgt, src].add(1.0)
    a = a + jnp.eye(num_nodes, dtype=jnp.float32)          # add self loops
    deg = a.sum(axis=1)                                     # in-degree incl. self loop
    dinv = jnp.where(deg > 0, 1.0 / jnp.sqrt(deg), 0.0)
    return dinv[:, None] * a * dinv[None, :]


def init_params(key, num_features_node, output_dim):
    f = num_features_node
    dims = [(f, f), (f, 2 * f), (2 * f, 4 * f), (4 * f, output_dim)]
    names = ["conv1", "conv2", "conv3", "fc_g1"]
    params = {}
    for name, (fi, fo) in zip(names, dims):
        key, kw, kb = jax.random.split(key, 3)
        scale = 1.0 / jnp.sqrt(jnp.float32(fi))
        params[name] = {
            "w": jax.random.uniform(kw, (fi, fo), jnp.float32, -scale, scale),
            "b": jax.random.uniform(kb, (1, fo), jnp.float32, -scale, scale),
        }
    return params


def node_gcn_net_forward(params, edge_index, node):
    n, f = node.shape
    f2, f4 = 2 * f, 4 * f
    out_dim = params["fc_g1"]["w"].shape[1]

    # Lane-dense padded sizes (exact: padding is zeros, sliced off at the end).
    n_p = _round_up(n, LANE)
    f_p = _round_up(f, LANE)
    f2_p = _round_up(f2, LANE)
    f4_p = _round_up(f4, LANE)
    out_p = _round_up(out_dim, LANE)

    # Normalized adjacency: built once per forward (cache across calls if the
    # graph is static), cast to bf16 and padded to a full-lane square.
    a_hat = build_norm_adj(edge_index, n)
    a_pad = _pad2(a_hat, n_p, n_p, jnp.bfloat16)
    x_pad = _pad2(node, n_p, f_p, jnp.bfloat16)

    w1 = _pad2(params["conv1"]["w"], f_p, f_p, jnp.bfloat16)
    b1 = _pad2(params["conv1"]["b"], 1, f_p, jnp.float32)
    w2 = _pad2(params["conv2"]["w"], f_p, f2_p, jnp.bfloat16)
    b2 = _pad2(params["conv2"]["b"], 1, f2_p, jnp.float32)
    w3 = _pad2(params["conv3"]["w"], f2_p, f4_p, jnp.bfloat16)
    b3 = _pad2(params["conv3"]["b"], 1, f4_p, jnp.float32)
    w4 = _pad2(params["fc_g1"]["w"], f4_p, out_p, jnp.bfloat16)
    b4 = _pad2(params["fc_g1"]["b"], 1, out_p, jnp.float32)

    vmem = pl.BlockSpec(memory_space=pltpu.MemorySpace.VMEM)
    out_pad = pl.pallas_call(
        _fused_gcn_kernel,
        out_shape=jax.ShapeDtypeStruct((n_p, out_p), jnp.float32),
        in_specs=[vmem] * 10,
        out_specs=vmem,
    )(a_pad, x_pad, w1, b1, w2, b2, w3, b3, w4, b4)

    return out_pad[:n, :out_dim]


# ----------------------------------- main ------------------------------------

if __name__ == "__main__":
    # Small shapes consistent with the module: 16 nodes, 32 node features,
    # output_dim 64 (default module sizes 128 / 1024 also work, just bigger).
    NUM_NODES = 16
    NUM_EDGES = 48
    NUM_FEATURES_NODE = 32
    OUTPUT_DIM = 64

    key = jax.random.PRNGKey(0)
    k_src, k_tgt, k_node, k_param = jax.random.split(key, 4)

    edge_index = jnp.stack(
        [
            jax.random.randint(k_src, (NUM_EDGES,), 0, NUM_NODES),
            jax.random.randint(k_tgt, (NUM_EDGES,), 0, NUM_NODES),
        ],
        axis=0,
    ).astype(jnp.int32)
    node = jax.random.normal(k_node, (NUM_NODES, NUM_FEATURES_NODE), jnp.float32)

    params = init_params(k_param, NUM_FEATURES_NODE, OUTPUT_DIM)

    fwd = jax.jit(node_gcn_net_forward)
    out = fwd(params, edge_index, node)
    out = jax.block_until_ready(out)

    assert out.shape == (NUM_NODES, OUTPUT_DIM), out.shape
    assert bool(jnp.all(jnp.isfinite(out))), "non-finite output"
    print("KERNEL_OK")
</pallas_src>

<mosaic_0001>
module attributes {stable_mosaic.version = 11 : i64} {
  func.func private @main(%arg0: i32) attributes {dimension_semantics = [#tpu.dimension_semantics<core_parallel>], iteration_bounds = array<i64: 2>, tpu.core_type = #tpu.core_type<sc_scalar_subcore>, window_params = []} {
    return
  }
}

module attributes {stable_mosaic.version = 11 : i64} {
  func.func private @main(%arg0: i32) attributes {dimension_semantics = [#tpu.dimension_semantics<core_parallel>], iteration_bounds = array<i64: 2>, tpu.core_type = #tpu.core_type<sc_scalar_subcore>, window_params = []} {
    return
  }
}

module attributes {stable_mosaic.version = 11 : i64} {
  func.func @_fused_gcn_kernel(%arg0: memref<128x128xbf16, #tpu.memory_space<vmem>>, %arg1: memref<128x128xbf16, #tpu.memory_space<vmem>>, %arg2: memref<128x128xbf16, #tpu.memory_space<vmem>>, %arg3: memref<1x128xf32, #tpu.memory_space<vmem>>, %arg4: memref<128x128xbf16, #tpu.memory_space<vmem>>, %arg5: memref<1x128xf32, #tpu.memory_space<vmem>>, %arg6: memref<128x128xbf16, #tpu.memory_space<vmem>>, %arg7: memref<1x128xf32, #tpu.memory_space<vmem>>, %arg8: memref<128x128xbf16, #tpu.memory_space<vmem>>, %arg9: memref<1x128xf32, #tpu.memory_space<vmem>>, %arg10: memref<128x128xf32, #tpu.memory_space<vmem>>) attributes {dimension_semantics = [], scalar_prefetch = 0 : i64, scratch_operands = 0 : i64, tpu.core_type = #tpu.core_type<tc>} {
    %c0 = arith.constant 0 : index
    %c0_0 = arith.constant 0 : index
    %0 = vector.load %arg0[%c0, %c0_0] : memref<128x128xbf16, #tpu.memory_space<vmem>>, vector<128x128xbf16>
    %c0_1 = arith.constant 0 : index
    %c0_2 = arith.constant 0 : index
    %1 = vector.load %arg1[%c0_1, %c0_2] : memref<128x128xbf16, #tpu.memory_space<vmem>>, vector<128x128xbf16>
    %cst = arith.constant dense<0.000000e+00> : vector<128x128xf32>
    %2 = tpu.matmul %0, %1, %cst {dimension_numbers = #tpu.dot_dimension_numbers<[1], [0], [0], [1], [0, 0, 1, 1], [], []>} : vector<128x128xbf16>, vector<128x128xbf16>, vector<128x128xf32> -> vector<128x128xf32>
    %3 = arith.truncf %2 : vector<128x128xf32> to vector<128x128xbf16>
    %c0_3 = arith.constant 0 : index
    %c0_4 = arith.constant 0 : index
    %4 = vector.load %arg2[%c0_3, %c0_4] : memref<128x128xbf16, #tpu.memory_space<vmem>>, vector<128x128xbf16>
    %cst_5 = arith.constant dense<0.000000e+00> : vector<128x128xf32>
    %5 = tpu.matmul %3, %4, %cst_5 {dimension_numbers = #tpu.dot_dimension_numbers<[1], [0], [0], [1], [0, 0, 1, 1], [], []>} : vector<128x128xbf16>, vector<128x128xbf16>, vector<128x128xf32> -> vector<128x128xf32>
    %c0_6 = arith.constant 0 : index
    %c0_7 = arith.constant 0 : index
    %6 = vector.load %arg3[%c0_6, %c0_7] : memref<1x128xf32, #tpu.memory_space<vmem>>, vector<1x128xf32>
    %7 = vector.broadcast %6 : vector<1x128xf32> to vector<128x128xf32>
    %8 = arith.addf %5, %7 : vector<128x128xf32>
    %cst_8 = arith.constant 0.000000e+00 : f32
    %9 = vector.broadcast %cst_8 : f32 to vector<128x128xf32>
    %10 = arith.maximumf %8, %9 : vector<128x128xf32>
    %11 = arith.truncf %10 : vector<128x128xf32> to vector<128x128xbf16>
    %cst_9 = arith.constant dense<0.000000e+00> : vector<128x128xf32>
    %12 = tpu.matmul %0, %11, %cst_9 {dimension_numbers = #tpu.dot_dimension_numbers<[1], [0], [0], [1], [0, 0, 1, 1], [], []>} : vector<128x128xbf16>, vector<128x128xbf16>, vector<128x128xf32> -> vector<128x128xf32>
    %13 = arith.truncf %12 : vector<128x128xf32> to vector<128x128xbf16>
    %c0_10 = arith.constant 0 : index
    %c0_11 = arith.constant 0 : index
    %14 = vector.load %arg4[%c0_10, %c0_11] : memref<128x128xbf16, #tpu.memory_space<vmem>>, vector<128x128xbf16>
    %cst_12 = arith.constant dense<0.000000e+00> : vector<128x128xf32>
    %15 = tpu.matmul %13, %14, %cst_12 {dimension_numbers = #tpu.dot_dimension_numbers<[1], [0], [0], [1], [0, 0, 1, 1], [], []>} : vector<128x128xbf16>, vector<128x128xbf16>, vector<128x128xf32> -> vector<128x128xf32>
    %c0_13 = arith.constant 0 : index
    %c0_14 = arith.constant 0 : index
    %16 = vector.load %arg5[%c0_13, %c0_14] : memref<1x128xf32, #tpu.memory_space<vmem>>, vector<1x128xf32>
    %17 = vector.broadcast %16 : vector<1x128xf32> to vector<128x128xf32>
    %18 = arith.addf %15, %17 : vector<128x128xf32>
    %cst_15 = arith.constant 0.000000e+00 : f32
    %19 = vector.broadcast %cst_15 : f32 to vector<128x128xf32>
    %20 = arith.maximumf %18, %19 : vector<128x128xf32>
    %21 = arith.truncf %20 : vector<128x128xf32> to vector<128x128xbf16>
    %cst_16 = arith.constant dense<0.000000e+00> : vector<128x128xf32>
    %22 = tpu.matmul %0, %21, %cst_16 {dimension_numbers = #tpu.dot_dimension_numbers<[1], [0], [0], [1], [0, 0, 1, 1], [], []>} : vector<128x128xbf16>, vector<128x128xbf16>, vector<128x128xf32> -> vector<128x128xf32>
    %23 = arith.truncf %22 : vector<128x128xf32> to vector<128x128xbf16>
    %c0_17 = arith.constant 0 : index
    %c0_18 = arith.constant 0 : index
    %24 = vector.load %arg6[%c0_17, %c0_18] : memref<128x128xbf16, #tpu.memory_space<vmem>>, vector<128x128xbf16>
    %cst_19 = arith.constant dense<0.000000e+00> : vector<128x128xf32>
    %25 = tpu.matmul %23, %24, %cst_19 {dimension_numbers = #tpu.dot_dimension_numbers<[1], [0], [0], [1], [0, 0, 1, 1], [], []>} : vector<128x128xbf16>, vector<128x128xbf16>, vector<128x128xf32> -> vector<128x128xf32>
    %c0_20 = arith.constant 0 : index
    %c0_21 = arith.constant 0 : index
    %26 = vector.load %arg7[%c0_20, %c0_21] : memref<1x128xf32, #tpu.memory_space<vmem>>, vector<1x128xf32>
    %27 = vector.broadcast %26 : vector<1x128xf32> to vector<128x128xf32>
    %28 = arith.addf %25, %27 : vector<128x128xf32>
    %cst_22 = arith.constant 0.000000e+00 : f32
    %29 = vector.broadcast %cst_22 : f32 to vector<128x128xf32>
    %30 = arith.maximumf %28, %29 : vector<128x128xf32>
    %31 = arith.truncf %30 : vector<128x128xf32> to vector<128x128xbf16>
    %c0_23 = arith.constant 0 : index
    %c0_24 = arith.constant 0 : index
    %32 = vector.load %arg8[%c0_23, %c0_24] : memref<128x128xbf16, #tpu.memory_space<vmem>>, vector<128x128xbf16>
    %cst_25 = arith.constant dense<0.000000e+00> : vector<128x128xf32>
    %33 = tpu.matmul %31, %32, %cst_25 {dimension_numbers = #tpu.dot_dimension_numbers<[1], [0], [0], [1], [0, 0, 1, 1], [], []>} : vector<128x128xbf16>, vector<128x128xbf16>, vector<128x128xf32> -> vector<128x128xf32>
    %c0_26 = arith.constant 0 : index
    %c0_27 = arith.constant 0 : index
    %34 = vector.load %arg9[%c0_26, %c0_27] : memref<1x128xf32, #tpu.memory_space<vmem>>, vector<1x128xf32>
    %35 = vector.broadcast %34 : vector<1x128xf32> to vector<128x128xf32>
    %36 = arith.addf %33, %35 : vector<128x128xf32>
    %c0_28 = arith.constant 0 : index
    %c0_29 = arith.constant 0 : index
    %37 = vector.load %arg10[%c0_28, %c0_29] : memref<128x128xf32, #tpu.memory_space<vmem>>, vector<128x128xf32>
    tpu.vector_store %arg10[%c0_28, %c0_29], %36 {strides = array<i32>} : memref<128x128xf32, #tpu.memory_space<vmem>>, vector<128x128xf32>,
    return
  }
}

</mosaic_0001>

<bundles_post_ra>
// kernel: node_gcn_net_forward.1
= control target key start
LH: loop header
LB: loop body
LE: loop exit
PB: predicated region body
PF: predicated region fallthrough
CT: control target
= control target key end

     0   :  { %s1994_s1 = inlined_call_operand.vmem [shape: bf16[128,128], index: 1, kind: input, shape index: {}]   ;;  %s1995_s0 = inlined_call_operand.vmem [shape: bf16[128,128], index: 0, kind: input, shape index: {}]   ;;  %s1996_s2 = inlined_call_operand.vmem [shape: bf16[128,128], index: 2, kind: input, shape index: {}]   ;;  %s1997_s4 = inlined_call_operand.vmem [shape: bf16[128,128], index: 4, kind: input, shape index: {}]   ;;  %s1998_s3 = inlined_call_operand.vmem [shape: f32[1,128], index: 3, kind: input, shape index: {}]   ;;  %s1999_s6 = inlined_call_operand.vmem [shape: bf16[128,128], index: 6, kind: input, shape index: {}]   ;;  %s2000_s5 = inlined_call_operand.vmem [shape: f32[1,128], index: 5, kind: input, shape index: {}]   ;;  %s2001_s8 = inlined_call_operand.vmem [shape: bf16[128,128], index: 8, kind: input, shape index: {}]   ;;  %s2002_s7 = inlined_call_operand.vmem [shape: f32[1,128], index: 7, kind: input, shape index: {}]   ;;  %s2003_s9 = inlined_call_operand.vmem [shape: f32[1,128], index: 9, kind: input, shape index: {}]   ;;  %s2004_s10 = inlined_call_operand.vmem [shape: f32[128,128], index: 10, kind: output, shape index: {}]  }
   0x1   :  { %v1647_v0 = vld [vmem:[%s1994_s1] sm:$0xff]   ;;  %v1648_v1 = vld [vmem:[%s1994_s1 + $0x8] sm:$0xff]   ;;  %v1649_v2 = vld [vmem:[%s1994_s1 + $0x10] sm:$0xff]  }
   0x2   :  { %1407 = vmatprep.subr.bf16.mxu0 %v1647_v0  ;;  %v1650_v3 = vld [vmem:[%s1994_s1 + $0x18] sm:$0xff]   ;;  %v1765_v4 = vld [vmem:[%s1995_s0] sm:$0xff]   ;;  %v1652_v6 = vld [vmem:[%s1994_s1 + $0x28] sm:$0xff]  }
   0x3   :  { %1408 = vmatpush3.bf16.msra.mxu0 %v1647_v0  ;;  %1423 = vmatprep.mubr.bf16.mxu0 %v1765_v4  ;;  %v1651_v5 = vld [vmem:[%s1994_s1 + $0x20] sm:$0xff]   ;;  %v1664_v8 = vld [vmem:[%s1996_s2 + $0x8] sm:$0xff]   ;;  %v1653_v9 = vld [vmem:[%s1994_s1 + $0x30] sm:$0xff]  }
   0x4   :  { %1409 = vmatprep.subr.bf16.mxu0 %v1648_v1  ;;  %v1663_v7 = vld [vmem:[%s1996_s2] sm:$0xff]   ;;  %v1665_v10 = vld [vmem:[%s1996_s2 + $0x10] sm:$0xff]   ;;  %v1654_v11 = vld [vmem:[%s1994_s1 + $0x38] sm:$0xff]  }
   0x5   :  { %1439 = vmatprep.subr.bf16.mxu1 %v1663_v7  ;;  %v1666_v12 = vld [vmem:[%s1996_s2 + $0x18] sm:$0xff]   ;;  %v1667_v13 = vld [vmem:[%s1996_s2 + $0x20] sm:$0xff]   ;;  %v1798_v14 = vld [vmem:[%s1995_s0 + $0x8] sm:$0xff]  }
   0x6   :  { %1440 = vmatpush3.bf16.msra.mxu1 %v1663_v7  ;;  %v1803_v15 = vld [vmem:[%s1995_s0 + $0x10] sm:$0xff]   ;;  %v1668_v16 = vld [vmem:[%s1996_s2 + $0x28] sm:$0xff]   ;;  %v1816_v18 = vld [vmem:[%s1995_s0 + $0x18] sm:$0xff]  }
   0x7   :  { %1410 = vmatpush3.bf16.msra.mxu0 %v1648_v1  ;;  %1441 = vmatprep.subr.bf16.mxu1 %v1664_v8  ;;  %v1669_v17 = vld [vmem:[%s1996_s2 + $0x30] sm:$0xff]   ;;  %v1821_v19 = vld [vmem:[%s1995_s0 + $0x20] sm:$0xff]   ;;  %v1828_v20 = vld [vmem:[%s1995_s0 + $0x28] sm:$0xff]  }
   0x8   :  { %1411 = vmatprep.subr.bf16.mxu0 %v1649_v2  ;;  %v1833_v21 = vld [vmem:[%s1995_s0 + $0x30] sm:$0xff]   ;;  %v1840_v22 = vld [vmem:[%s1995_s0 + $0x38] sm:$0xff]   ;;  %v1671_v48 = vld [vmem:[%s1997_s4] sm:$0xff]  }
   0x9   :  { %v1670_v23 = vld [vmem:[%s1996_s2 + $0x38] sm:$0xff]   ;;  %v1672_v49 = vld [vmem:[%s1997_s4 + $0x8] sm:$0xff]   ;;  %v1673_v50 = vld [vmem:[%s1997_s4 + $0x10] sm:$0xff]  }
   0xa   :  { %1442 = vmatpush3.bf16.msra.mxu1 %v1664_v8  ;;  %v1674_v51 = vld [vmem:[%s1997_s4 + $0x18] sm:$0xff]   ;;  %v1675_v52 = vld [vmem:[%s1997_s4 + $0x20] sm:$0xff]   ;;  %v1676_v53 = vld [vmem:[%s1997_s4 + $0x28] sm:$0xff]  }
   0xb   :  { %1412 = vmatpush3.bf16.msra.mxu0 %v1649_v2  ;;  %1443 = vmatprep.subr.bf16.mxu1 %v1665_v10  ;;  %v1677_v54 = vld [vmem:[%s1997_s4 + $0x30] sm:$0xff]   ;;  %v1259_v55 = vld [vmem:[%s1998_s3] ss:$0 sm:$0xff] }
   0xc   :  { %1413 = vmatprep.subr.bf16.mxu0 %v1650_v3 }
   0xe   :  { %1444 = vmatpush3.bf16.msra.mxu1 %v1665_v10 }
   0xf   :  { %1414 = vmatpush3.bf16.msra.mxu0 %v1650_v3  ;;  %1445 = vmatprep.subr.bf16.mxu1 %v1666_v12 }
  0x10   :  { %1415 = vmatprep.subr.bf16.mxu0 %v1651_v5 }
  0x12   :  { %1446 = vmatpush3.bf16.msra.mxu1 %v1666_v12 }
  0x13   :  { %1416 = vmatpush3.bf16.msra.mxu0 %v1651_v5  ;;  %1447 = vmatprep.subr.bf16.mxu1 %v1667_v13 }
  0x14   :  { %1417 = vmatprep.subr.bf16.mxu0 %v1652_v6 }
  0x16   :  { %1448 = vmatpush3.bf16.msra.mxu1 %v1667_v13 }
  0x17   :  { %1418 = vmatpush3.bf16.msra.mxu0 %v1652_v6  ;;  %1449 = vmatprep.subr.bf16.mxu1 %v1668_v16 }
  0x18   :  { %1419 = vmatprep.subr.bf16.mxu0 %v1653_v9 }
  0x1a   :  { %1450 = vmatpush3.bf16.msra.mxu1 %v1668_v16 }
  0x1b   :  { %1420 = vmatpush3.bf16.msra.mxu0 %v1653_v9  ;;  %1451 = vmatprep.subr.bf16.mxu1 %v1669_v17 }
  0x1c   :  { %1421 = vmatprep.subr.bf16.mxu0 %v1654_v11 }
  0x1e   :  { %1452 = vmatpush3.bf16.msra.mxu1 %v1669_v17 }
  0x1f   :  { %1422 = vmatpush3.bf16.msra.mxu0 %v1654_v11  ;;  %1453 = vmatprep.subr.bf16.mxu1 %v1670_v23 }
  0x22   :  { %1424 = vmatmul.mubr.bf16.vlgmr.msra.gmra.mrb[0].mxu0 %v1798_v14  ;;  %1454 = vmatpush3.bf16.msra.mxu1 %v1670_v23 }
  0x23   :  { %1427 = vmatprep.mubr.bf16.mxu0 %v1803_v15  ;;  %1503 = vmatprep.subr.bf16.mxu1 %v1671_v48 }
  0x2a   :  { %1428 = vmatmul.mubr.bf16.gmra.mrb[4].mxu0 %v1816_v18 }
  0x2b   :  { %1431 = vmatprep.mubr.bf16.mxu0 %v1821_v19 }
  0x32   :  { %1432 = vmatmul.mubr.bf16.gmra.mrb[8].mxu0 %v1828_v20 }
  0x33   :  { %1435 = vmatprep.mubr.bf16.mxu0 %v1833_v21 }
  0x3a   :  { %1436 = vmatmul.mubr.bf16.gmra.mrb[12].mxu0 %v1840_v22 }
  0x3b   :  { %1487 = vmatprep.mubr.bf16.mxu0 %v1765_v4 }
  0xf5   :  { %v1425_v24 = vpop.f32.mrb[0].mxu0 }
  0xf6   :  { %v198_v25 = vpop.f32.mrb[1].mxu0 }
  0xf7   :  { %v1426_v26 = vpop.f32.mrb[2].mxu0 }
  0xf8   :  { %v262_v27 = vpack.c.bf16 %v1426_v26, %v1425_v24  ;;  %v201_v28 = vpop.f32.mrb[3].mxu0 }
  0xf9   :  { %v261_v29 = vpack.c.bf16 %v201_v28, %v198_v25 }
  0xfb   :  { %1455 = vmatprep.mubr.bf16.mxu1 %v261_v29 }
  0xfc   :  { %1456 = vmatmul.mubr.bf16.vlgmr.msra.gmra.mrb[0].mxu1 %v262_v27 }
  0xfd   :  { %v1429_v30 = vpop.f32.mrb[4].mxu0  ;;  %1504 = vmatpush3.bf16.msra.mxu1 %v1671_v48 }
  0xfe   :  { %v214_v31 = vpop.f32.mrb[5].mxu0  ;;  %1505 = vmatprep.subr.bf16.mxu1 %v1672_v49 }
  0xff   :  { %v1430_v32 = vpop.f32.mrb[6].mxu0 }
 0x100   :  { %v264_v33 = vpack.c.bf16 %v1430_v32, %v1429_v30  ;;  %v217_v34 = vpop.f32.mrb[7].mxu0 }
 0x101   :  { %v263_v35 = vpack.c.bf16 %v217_v34, %v214_v31  ;;  %1506 = vmatpush3.bf16.msra.mxu1 %v1672_v49 }
 0x102   :  { %1507 = vmatprep.subr.bf16.mxu1 %v1673_v50 }
 0x103   :  { %1459 = vmatprep.mubr.bf16.mxu1 %v263_v35 }
 0x104   :  { %1460 = vmatmul.mubr.bf16.gmra.mrb[4].mxu1 %v264_v33 }
 0x105   :  { %v1433_v36 = vpop.f32.mrb[8].mxu0  ;;  %1508 = vmatpush3.bf16.msra.mxu1 %v1673_v50 }
 0x106   :  { %v230_v37 = vpop.f32.mrb[9].mxu0  ;;  %1509 = vmatprep.subr.bf16.mxu1 %v1674_v51 }
 0x107   :  { %v1434_v38 = vpop.f32.mrb[10].mxu0 }
 0x108   :  { %v266_v39 = vpack.c.bf16 %v1434_v38, %v1433_v36  ;;  %v233_v40 = vpop.f32.mrb[11].mxu0 }
 0x109   :  { %v265_v41 = vpack.c.bf16 %v233_v40, %v230_v37  ;;  %1510 = vmatpush3.bf16.msra.mxu1 %v1674_v51 }
 0x10a   :  { %1511 = vmatprep.subr.bf16.mxu1 %v1675_v52 }
 0x10b   :  { %1463 = vmatprep.mubr.bf16.mxu1 %v265_v41 }
 0x10c   :  { %1464 = vmatmul.mubr.bf16.gmra.mrb[8].mxu1 %v266_v39 }
 0x10d   :  { %v1437_v42 = vpop.f32.mrb[12].mxu0  ;;  %1512 = vmatpush3.bf16.msra.mxu1 %v1675_v52 }
 0x10e   :  { %v246_v43 = vpop.f32.mrb[13].mxu0  ;;  %1513 = vmatprep.subr.bf16.mxu1 %v1676_v53 }
 0x10f   :  { %v1438_v44 = vpop.f32.mrb[14].mxu0 }
 0x110   :  { %v268_v45 = vpack.c.bf16 %v1438_v44, %v1437_v42  ;;  %v249_v46 = vpop.f32.mrb[15].mxu0 }
 0x111   :  { %v267_v47 = vpack.c.bf16 %v249_v46, %v246_v43  ;;  %1514 = vmatpush3.bf16.msra.mxu1 %v1676_v53 }
 0x112   :  { %1515 = vmatprep.subr.bf16.mxu1 %v1677_v54 }
 0x113   :  { %1467 = vmatprep.mubr.bf16.mxu1 %v267_v47 }
 0x114   :  { %1468 = vmatmul.mubr.bf16.gmra.mrb[12].mxu1 %v268_v45 }
 0x115   :  { %1516 = vmatpush3.bf16.msra.mxu1 %v1677_v54 }
 0x1cf   :  { %v1457_v56 = vpop.f32.mrb[0].mxu1 }
 0x1d0   :  { %v383_v57 = vadd.f32 %v1457_v56, %v1259_v55  ;;  %v374_v58 = vpop.f32.mrb[1].mxu1 }
 0x1d1   :  { %v375_v59 = vadd.f32 %v1259_v55, %v374_v58  ;;  %v1458_v60 = vpop.f32.mrb[2].mxu1 }
 0x1d2   :  { %v386_v61 = vadd.f32 %v1458_v60, %v1259_v55  ;;  %v377_v62 = vpop.f32.mrb[3].mxu1  ;;  %v439_v0 = vmax.f32 %v383_v57, 0.0 }
 0x1d3   :  { %v378_v63 = vadd.f32 %v1259_v55, %v377_v62  ;;  %v437_v2 = vmax.f32 %v375_v59, 0.0 }
 0x1d4   :  { %v440_v1 = vmax.f32 %v386_v61, 0.0 }
 0x1d5   :  { %v438_v3 = vmax.f32 %v378_v63, 0.0 }
 0x1d6   :  { %v454_v5 = vpack.c.bf16 %v440_v1, %v439_v0 }
 0x1d7   :  { %v453_v6 = vpack.c.bf16 %v438_v3, %v437_v2  ;;  %v1461_v7 = vpop.f32.mrb[4].mxu1 }
 0x1d8   :  { %v399_v8 = vadd.f32 %v1461_v7, %v1259_v55  ;;  %v390_v9 = vpop.f32.mrb[5].mxu1 }
 0x1d9   :  { %v391_v10 = vadd.f32 %v1259_v55, %v390_v9  ;;  %v1462_v11 = vpop.f32.mrb[6].mxu1  ;;  %1471 = vmatprep.subr.bf16.mxu0 %v453_v6 }
 0x1da   :  { %v402_v12 = vadd.f32 %v1462_v11, %v1259_v55  ;;  %v393_v13 = vpop.f32.mrb[7].mxu1  ;;  %1472 = vmatpush3.bf16.msra.mxu0 %v453_v6  ;;  %v443_v17 = vmax.f32 %v399_v8, 0.0 }
 0x1db   :  { %v394_v16 = vadd.f32 %v1259_v55, %v393_v13  ;;  %1473 = vmatprep.subr.bf16.mxu0 %v454_v5  ;;  %v441_v24 = vmax.f32 %v391_v10, 0.0 }
 0x1dc   :  { %v444_v23 = vmax.f32 %v402_v12, 0.0 }
 0x1dd   :  { %v442_v25 = vmax.f32 %v394_v16, 0.0 }
 0x1de   :  { %v456_v26 = vpack.c.bf16 %v444_v23, %v443_v17  ;;  %1474 = vmatpush3.bf16.msra.mxu0 %v454_v5 }
 0x1df   :  { %v455_v27 = vpack.c.bf16 %v442_v25, %v441_v24  ;;  %v1465_v28 = vpop.f32.mrb[8].mxu1  ;;  %v1679_v24 = vld [vmem:[%s1999_s6] sm:$0xff]   ;;  %v1680_v25 = vld [vmem:[%s1999_s6 + $0x8] sm:$0xff]  }
 0x1e0   :  { %v415_v29 = vadd.f32 %v1465_v28, %v1259_v55  ;;  %v406_v30 = vpop.f32.mrb[9].mxu1  ;;  %v1683_v28 = vld [vmem:[%s1999_s6 + $0x20] sm:$0xff]  }
 0x1e1   :  { %v407_v31 = vadd.f32 %v1259_v55, %v406_v30  ;;  %v1466_v32 = vpop.f32.mrb[10].mxu1  ;;  %1475 = vmatprep.subr.bf16.mxu0 %v455_v27  ;;  %v1685_v30 = vld [vmem:[%s1999_s6 + $0x30] sm:$0xff]  }
 0x1e2   :  { %v418_v33 = vadd.f32 %v1466_v32, %v1259_v55  ;;  %v409_v34 = vpop.f32.mrb[11].mxu1  ;;  %1476 = vmatpush3.bf16.msra.mxu0 %v455_v27  ;;  %v447_v36 = vmax.f32 %v415_v29, 0.0  ;;  %v1682_v27 = vld [vmem:[%s1999_s6 + $0x18] sm:$0xff]   ;;  %v1684_v29 = vld [vmem:[%s1999_s6 + $0x28] sm:$0xff]  }
 0x1e3   :  { %v410_v35 = vadd.f32 %v1259_v55, %v409_v34  ;;  %1477 = vmatprep.subr.bf16.mxu0 %v456_v26  ;;  %v445_v38 = vmax.f32 %v407_v31, 0.0  ;;  %v1268_v31 = vld [vmem:[%s2000_s5] ss:$0 sm:$0xff] }
 0x1e4   :  { %v448_v37 = vmax.f32 %v418_v33, 0.0 }
 0x1e5   :  { %v446_v39 = vmax.f32 %v410_v35, 0.0 }
 0x1e6   :  { %v458_v40 = vpack.c.bf16 %v448_v37, %v447_v36  ;;  %1478 = vmatpush3.bf16.msra.mxu0 %v456_v26  ;;  %v1681_v26 = vld [vmem:[%s1999_s6 + $0x10] sm:$0xff]  }
 0x1e7   :  { %v457_v41 = vpack.c.bf16 %v446_v39, %v445_v38  ;;  %v1469_v42 = vpop.f32.mrb[12].mxu1 }
 0x1e8   :  { %v431_v43 = vadd.f32 %v1469_v42, %v1259_v55  ;;  %v422_v44 = vpop.f32.mrb[13].mxu1 }
 0x1e9   :  { %v423_v45 = vadd.f32 %v1259_v55, %v422_v44  ;;  %v1470_v46 = vpop.f32.mrb[14].mxu1  ;;  %1479 = vmatprep.subr.bf16.mxu0 %v457_v41 }
 0x1ea   :  { %v434_v47 = vadd.f32 %v1470_v46, %v1259_v55  ;;  %v425_v48 = vpop.f32.mrb[15].mxu1  ;;  %1480 = vmatpush3.bf16.msra.mxu0 %v457_v41  ;;  %v451_v50 = vmax.f32 %v431_v43, 0.0 }
 0x1eb   :  { %v426_v49 = vadd.f32 %v1259_v55, %v425_v48  ;;  %1481 = vmatprep.subr.bf16.mxu0 %v458_v40  ;;  %v449_v52 = vmax.f32 %v423_v45, 0.0  ;;  %v1678_v55 = vld [vmem:[%s1997_s4 + $0x38] sm:$0xff]  }
 0x1ec   :  { %v452_v51 = vmax.f32 %v434_v47, 0.0  ;;  %1517 = vmatprep.subr.bf16.mxu1 %v1678_v55 }
 0x1ed   :  { %v450_v53 = vmax.f32 %v426_v49, 0.0  ;;  %1518 = vmatpush3.bf16.msra.mxu1 %v1678_v55 }
 0x1ee   :  { %v460_v54 = vpack.c.bf16 %v452_v51, %v451_v50  ;;  %1482 = vmatpush3.bf16.msra.mxu0 %v458_v40  ;;  %1567 = vmatprep.subr.bf16.mxu1 %v1679_v24 }
 0x1ef   :  { %v459_v56 = vpack.c.bf16 %v450_v53, %v449_v52 }
 0x1f1   :  { %1483 = vmatprep.subr.bf16.mxu0 %v459_v56 }
 0x1f2   :  { %1484 = vmatpush3.bf16.msra.mxu0 %v459_v56 }
 0x1f3   :  { %1485 = vmatprep.subr.bf16.mxu0 %v460_v54 }
 0x1f6   :  { %1486 = vmatpush3.bf16.msra.mxu0 %v460_v54 }
 0x1f9   :  { %1488 = vmatmul.mubr.bf16.vlgmr.msra.gmra.mrb[16].mxu0 %v1798_v14 }
 0x1fa   :  { %1491 = vmatprep.mubr.bf16.mxu0 %v1803_v15 }
 0x201   :  { %1492 = vmatmul.mubr.bf16.gmra.mrb[20].mxu0 %v1816_v18 }
 0x202   :  { %1495 = vmatprep.mubr.bf16.mxu0 %v1821_v19 }
 0x209   :  { %1496 = vmatmul.mubr.bf16.gmra.mrb[24].mxu0 %v1828_v20 }
 0x20a   :  { %1499 = vmatprep.mubr.bf16.mxu0 %v1833_v21 }
 0x211   :  { %1500 = vmatmul.mubr.bf16.gmra.mrb[28].mxu0 %v1840_v22 }
 0x212   :  { %1551 = vmatprep.mubr.bf16.mxu0 %v1765_v4 }
 0x2cc   :  { %v1489_v57 = vpop.f32.mrb[16].mxu0 }
 0x2cd   :  { %v495_v58 = vpop.f32.mrb[17].mxu0 }
 0x2ce   :  { %v1490_v59 = vpop.f32.mrb[18].mxu0 }
 0x2cf   :  { %v559_v60 = vpack.c.bf16 %v1490_v59, %v1489_v57  ;;  %v498_v61 = vpop.f32.mrb[19].mxu0 }
 0x2d0   :  { %v558_v62 = vpack.c.bf16 %v498_v61, %v495_v58 }
 0x2d2   :  { %1519 = vmatprep.mubr.bf16.mxu1 %v558_v62 }
 0x2d3   :  { %1520 = vmatmul.mubr.bf16.vlgmr.msra.gmra.mrb[16].mxu1 %v559_v60 }
 0x2d4   :  { %v1493_v63 = vpop.f32.mrb[20].mxu0  ;;  %1568 = vmatpush3.bf16.msra.mxu1 %v1679_v24 }
 0x2d5   :  { %v511_v0 = vpop.f32.mrb[21].mxu0  ;;  %1569 = vmatprep.subr.bf16.mxu1 %v1680_v25 }
 0x2d6   :  { %v1494_v1 = vpop.f32.mrb[22].mxu0 }
 0x2d7   :  { %v561_v2 = vpack.c.bf16 %v1494_v1, %v1493_v63  ;;  %v514_v3 = vpop.f32.mrb[23].mxu0 }
 0x2d8   :  { %v560_v4 = vpack.c.bf16 %v514_v3, %v511_v0  ;;  %1570 = vmatpush3.bf16.msra.mxu1 %v1680_v25 }
 0x2d9   :  { %1571 = vmatprep.subr.bf16.mxu1 %v1681_v26 }
 0x2da   :  { %1523 = vmatprep.mubr.bf16.mxu1 %v560_v4 }
 0x2db   :  { %1524 = vmatmul.mubr.bf16.gmra.mrb[20].mxu1 %v561_v2 }
 0x2dc   :  { %v1497_v5 = vpop.f32.mrb[24].mxu0  ;;  %1572 = vmatpush3.bf16.msra.mxu1 %v1681_v26 }
 0x2dd   :  { %v527_v6 = vpop.f32.mrb[25].mxu0  ;;  %1573 = vmatprep.subr.bf16.mxu1 %v1682_v27 }
 0x2de   :  { %v1498_v7 = vpop.f32.mrb[26].mxu0 }
 0x2df   :  { %v563_v8 = vpack.c.bf16 %v1498_v7, %v1497_v5  ;;  %v530_v9 = vpop.f32.mrb[27].mxu0 }
 0x2e0   :  { %v562_v10 = vpack.c.bf16 %v530_v9, %v527_v6  ;;  %1574 = vmatpush3.bf16.msra.mxu1 %v1682_v27 }
 0x2e1   :  { %1575 = vmatprep.subr.bf16.mxu1 %v1683_v28 }
 0x2e2   :  { %1527 = vmatprep.mubr.bf16.mxu1 %v562_v10 }
 0x2e3   :  { %1528 = vmatmul.mubr.bf16.gmra.mrb[24].mxu1 %v563_v8 }
 0x2e4   :  { %v1501_v11 = vpop.f32.mrb[28].mxu0  ;;  %1576 = vmatpush3.bf16.msra.mxu1 %v1683_v28 }
 0x2e5   :  { %v543_v12 = vpop.f32.mrb[29].mxu0  ;;  %1577 = vmatprep.subr.bf16.mxu1 %v1684_v29 }
 0x2e6   :  { %v1502_v13 = vpop.f32.mrb[30].mxu0 }
 0x2e7   :  { %v565_v16 = vpack.c.bf16 %v1502_v13, %v1501_v11  ;;  %v546_v17 = vpop.f32.mrb[31].mxu0 }
 0x2e8   :  { %v564_v23 = vpack.c.bf16 %v546_v17, %v543_v12  ;;  %1578 = vmatpush3.bf16.msra.mxu1 %v1684_v29 }
 0x2e9   :  { %1579 = vmatprep.subr.bf16.mxu1 %v1685_v30 }
 0x2ea   :  { %1531 = vmatprep.mubr.bf16.mxu1 %v564_v23 }
 0x2eb   :  { %1532 = vmatmul.mubr.bf16.gmra.mrb[28].mxu1 %v565_v16 }
 0x2ec   :  { %1580 = vmatpush3.bf16.msra.mxu1 %v1685_v30 }
 0x3a6   :  { %v1521_v32 = vpop.f32.mrb[16].mxu1 }
 0x3a7   :  { %v680_v33 = vadd.f32 %v1521_v32, %v1268_v31  ;;  %v671_v34 = vpop.f32.mrb[17].mxu1 }
 0x3a8   :  { %v672_v35 = vadd.f32 %v1268_v31, %v671_v34  ;;  %v1522_v36 = vpop.f32.mrb[18].mxu1 }
 0x3a9   :  { %v683_v37 = vadd.f32 %v1522_v36, %v1268_v31  ;;  %v674_v38 = vpop.f32.mrb[19].mxu1  ;;  %v736_v40 = vmax.f32 %v680_v33, 0.0 }
 0x3aa   :  { %v675_v39 = vadd.f32 %v1268_v31, %v674_v38  ;;  %v734_v42 = vmax.f32 %v672_v35, 0.0 }
 0x3ab   :  { %v737_v41 = vmax.f32 %v683_v37, 0.0 }
 0x3ac   :  { %v735_v43 = vmax.f32 %v675_v39, 0.0 }
 0x3ad   :  { %v751_v44 = vpack.c.bf16 %v737_v41, %v736_v40 }
 0x3ae   :  { %v750_v45 = vpack.c.bf16 %v735_v43, %v734_v42  ;;  %v1525_v46 = vpop.f32.mrb[20].mxu1 }
 0x3af   :  { %v696_v47 = vadd.f32 %v1525_v46, %v1268_v31  ;;  %v687_v48 = vpop.f32.mrb[21].mxu1 }
 0x3b0   :  { %v688_v49 = vadd.f32 %v1268_v31, %v687_v48  ;;  %v1526_v50 = vpop.f32.mrb[22].mxu1  ;;  %1535 = vmatprep.subr.bf16.mxu0 %v750_v45 }
 0x3b1   :  { %v699_v51 = vadd.f32 %v1526_v50, %v1268_v31  ;;  %v690_v52 = vpop.f32.mrb[23].mxu1  ;;  %1536 = vmatpush3.bf16.msra.mxu0 %v750_v45  ;;  %v740_v54 = vmax.f32 %v696_v47, 0.0 }
 0x3b2   :  { %v691_v53 = vadd.f32 %v1268_v31, %v690_v52  ;;  %1537 = vmatprep.subr.bf16.mxu0 %v751_v44  ;;  %v738_v55 = vmax.f32 %v688_v49, 0.0 }
 0x3b3   :  { %v741_v56 = vmax.f32 %v699_v51, 0.0 }
 0x3b4   :  { %v739_v57 = vmax.f32 %v691_v53, 0.0 }
 0x3b5   :  { %v753_v58 = vpack.c.bf16 %v741_v56, %v740_v54  ;;  %1538 = vmatpush3.bf16.msra.mxu0 %v751_v44  ;;  %v1693_v56 = vld [vmem:[%s2001_s8 + $0x30] sm:$0xff]  }
 0x3b6   :  { %v752_v59 = vpack.c.bf16 %v739_v57, %v738_v55  ;;  %v1529_v60 = vpop.f32.mrb[24].mxu1  ;;  %v1694_v55 = vld [vmem:[%s2001_s8 + $0x38] sm:$0xff]   ;;  %v1277_v57 = vld [vmem:[%s2002_s7] ss:$0 sm:$0xff] }
 0x3b7   :  { %v712_v61 = vadd.f32 %v1529_v60, %v1268_v31  ;;  %v703_v62 = vpop.f32.mrb[25].mxu1 }
 0x3b8   :  { %v704_v63 = vadd.f32 %v1268_v31, %v703_v62  ;;  %v1530_v0 = vpop.f32.mrb[26].mxu1  ;;  %1539 = vmatprep.subr.bf16.mxu0 %v752_v59 }
 0x3b9   :  { %v715_v1 = vadd.f32 %v1530_v0, %v1268_v31  ;;  %v706_v2 = vpop.f32.mrb[27].mxu1  ;;  %1540 = vmatpush3.bf16.msra.mxu0 %v752_v59  ;;  %v744_v4 = vmax.f32 %v712_v61, 0.0 }
 0x3ba   :  { %v707_v3 = vadd.f32 %v1268_v31, %v706_v2  ;;  %1541 = vmatprep.subr.bf16.mxu0 %v753_v58  ;;  %v742_v6 = vmax.f32 %v704_v63, 0.0 }
 0x3bb   :  { %v745_v5 = vmax.f32 %v715_v1, 0.0 }
 0x3bc   :  { %v743_v7 = vmax.f32 %v707_v3, 0.0 }
 0x3bd   :  { %v755_v8 = vpack.c.bf16 %v745_v5, %v744_v4  ;;  %1542 = vmatpush3.bf16.msra.mxu0 %v753_v58 }
 0x3be   :  { %v754_v9 = vpack.c.bf16 %v743_v7, %v742_v6  ;;  %v1533_v10 = vpop.f32.mrb[28].mxu1 }
 0x3bf   :  { %v728_v11 = vadd.f32 %v1533_v10, %v1268_v31  ;;  %v719_v12 = vpop.f32.mrb[29].mxu1 }
 0x3c0   :  { %v720_v13 = vadd.f32 %v1268_v31, %v719_v12  ;;  %v1534_v16 = vpop.f32.mrb[30].mxu1  ;;  %1543 = vmatprep.subr.bf16.mxu0 %v754_v9 }
 0x3c1   :  { %v731_v17 = vadd.f32 %v1534_v16, %v1268_v31  ;;  %v722_v23 = vpop.f32.mrb[31].mxu1  ;;  %1544 = vmatpush3.bf16.msra.mxu0 %v754_v9  ;;  %v748_v25 = vmax.f32 %v728_v11, 0.0 }
 0x3c2   :  { %v723_v24 = vadd.f32 %v1268_v31, %v722_v23  ;;  %1545 = vmatprep.subr.bf16.mxu0 %v755_v8  ;;  %v746_v27 = vmax.f32 %v720_v13, 0.0  ;;  %v1686_v31 = vld [vmem:[%s1999_s6 + $0x38] sm:$0xff]  }
 0x3c3   :  { %v749_v26 = vmax.f32 %v731_v17, 0.0  ;;  %1581 = vmatprep.subr.bf16.mxu1 %v1686_v31 }
 0x3c4   :  { %v747_v28 = vmax.f32 %v723_v24, 0.0  ;;  %1582 = vmatpush3.bf16.msra.mxu1 %v1686_v31 }
 0x3c5   :  { %v757_v29 = vpack.c.bf16 %v749_v26, %v748_v25  ;;  %1546 = vmatpush3.bf16.msra.mxu0 %v755_v8 }
 0x3c6   :  { %v756_v30 = vpack.c.bf16 %v747_v28, %v746_v27 }
 0x3c8   :  { %1547 = vmatprep.subr.bf16.mxu0 %v756_v30 }
 0x3c9   :  { %1548 = vmatpush3.bf16.msra.mxu0 %v756_v30 }
 0x3ca   :  { %1549 = vmatprep.subr.bf16.mxu0 %v757_v29 }
 0x3cd   :  { %1550 = vmatpush3.bf16.msra.mxu0 %v757_v29 }
 0x3d0   :  { %1552 = vmatmul.mubr.bf16.vlgmr.msra.gmra.mrb[32].mxu0 %v1798_v14  ;;  %v1687_v14 = vld [vmem:[%s2001_s8] sm:$0xff]  }
 0x3d1   :  { %1555 = vmatprep.mubr.bf16.mxu0 %v1803_v15  ;;  %v1688_v15 = vld [vmem:[%s2001_s8 + $0x8] sm:$0xff]   ;;  %1599 = vmatprep.subr.bf16.mxu0 %v1687_v14 }
 0x3d2   :  { %1631 = vmatprep.subr.bf16.mxu1 %v1687_v14  ;;  %1600 = vmatpush3.bf16.msra.mxu0 %v1687_v14 }
 0x3d3   :  { %1601 = vmatprep.subr.bf16.mxu0 %v1688_v15 }
 0x3d6   :  { %1602 = vmatpush3.bf16.msra.mxu0 %v1688_v15 }
 0x3d8   :  { %1556 = vmatmul.mubr.bf16.gmra.mrb[36].mxu0 %v1816_v18  ;;  %v1689_v18 = vld [vmem:[%s2001_s8 + $0x10] sm:$0xff]  }
 0x3d9   :  { %1559 = vmatprep.mubr.bf16.mxu0 %v1821_v19  ;;  %1603 = vmatprep.subr.bf16.mxu0 %v1689_v18  ;;  %v1690_v19 = vld [vmem:[%s2001_s8 + $0x18] sm:$0xff]  }
 0x3da   :  { %1604 = vmatpush3.bf16.msra.mxu0 %v1689_v18 }
 0x3db   :  { %1605 = vmatprep.subr.bf16.mxu0 %v1690_v19 }
 0x3de   :  { %1606 = vmatpush3.bf16.msra.mxu0 %v1690_v19 }
 0x3e0   :  { %1560 = vmatmul.mubr.bf16.gmra.mrb[40].mxu0 %v1828_v20  ;;  %v1691_v20 = vld [vmem:[%s2001_s8 + $0x20] sm:$0xff]  }
 0x3e1   :  { %1563 = vmatprep.mubr.bf16.mxu0 %v1833_v21  ;;  %1607 = vmatprep.subr.bf16.mxu0 %v1691_v20  ;;  %v1692_v21 = vld [vmem:[%s2001_s8 + $0x28] sm:$0xff]  }
 0x3e2   :  { %1608 = vmatpush3.bf16.msra.mxu0 %v1691_v20 }
 0x3e3   :  { %1609 = vmatprep.subr.bf16.mxu0 %v1692_v21 }
 0x3e6   :  { %1610 = vmatpush3.bf16.msra.mxu0 %v1692_v21 }
 0x3e7   :  { %1611 = vmatprep.subr.bf16.mxu0 %v1693_v56 }
 0x3e8   :  { %1564 = vmatmul.mubr.bf16.gmra.mrb[44].mxu0 %v1840_v22 }
 0x3ea   :  { %1612 = vmatpush3.bf16.msra.mxu0 %v1693_v56 }
 0x3eb   :  { %1613 = vmatprep.subr.bf16.mxu0 %v1694_v55 }
 0x3ee   :  { %1614 = vmatpush3.bf16.msra.mxu0 %v1694_v55 }
 0x4a3   :  { %v1553_v22 = vpop.f32.mrb[32].mxu0 }
 0x4a4   :  { %v792_v32 = vpop.f32.mrb[33].mxu0 }
 0x4a5   :  { %v1554_v33 = vpop.f32.mrb[34].mxu0 }
 0x4a6   :  { %v856_v34 = vpack.c.bf16 %v1554_v33, %v1553_v22  ;;  %v795_v35 = vpop.f32.mrb[35].mxu0 }
 0x4a7   :  { %v855_v36 = vpack.c.bf16 %v795_v35, %v792_v32 }
 0x4a9   :  { %1583 = vmatprep.mubr.bf16.mxu1 %v855_v36 }
 0x4aa   :  { %1584 = vmatmul.mubr.bf16.vlgmr.msra.gmra.mrb[32].mxu1 %v856_v34 }
 0x4ab   :  { %v1557_v37 = vpop.f32.mrb[36].mxu0  ;;  %1639 = vmatpush3.bf16.msra.mxu1 %v1687_v14 }
 0x4ac   :  { %v808_v38 = vpop.f32.mrb[37].mxu0  ;;  %1632 = vmatprep.subr.bf16.mxu1 %v1688_v15 }
 0x4ad   :  { %v1558_v39 = vpop.f32.mrb[38].mxu0 }
 0x4ae   :  { %v858_v40 = vpack.c.bf16 %v1558_v39, %v1557_v37  ;;  %v811_v41 = vpop.f32.mrb[39].mxu0 }
 0x4af   :  { %v857_v42 = vpack.c.bf16 %v811_v41, %v808_v38  ;;  %1640 = vmatpush3.bf16.msra.mxu1 %v1688_v15 }
 0x4b0   :  { %1633 = vmatprep.subr.bf16.mxu1 %v1689_v18 }
 0x4b1   :  { %1587 = vmatprep.mubr.bf16.mxu1 %v857_v42 }
 0x4b2   :  { %1588 = vmatmul.mubr.bf16.gmra.mrb[36].mxu1 %v858_v40 }
 0x4b3   :  { %v1561_v43 = vpop.f32.mrb[40].mxu0  ;;  %1641 = vmatpush3.bf16.msra.mxu1 %v1689_v18 }
 0x4b4   :  { %v824_v44 = vpop.f32.mrb[41].mxu0  ;;  %1634 = vmatprep.subr.bf16.mxu1 %v1690_v19 }
 0x4b5   :  { %v1562_v45 = vpop.f32.mrb[42].mxu0 }
 0x4b6   :  { %v860_v46 = vpack.c.bf16 %v1562_v45, %v1561_v43  ;;  %v827_v47 = vpop.f32.mrb[43].mxu0 }
 0x4b7   :  { %v859_v48 = vpack.c.bf16 %v827_v47, %v824_v44  ;;  %1642 = vmatpush3.bf16.msra.mxu1 %v1690_v19 }
 0x4b8   :  { %1635 = vmatprep.subr.bf16.mxu1 %v1691_v20 }
 0x4b9   :  { %1591 = vmatprep.mubr.bf16.mxu1 %v859_v48 }
 0x4ba   :  { %1592 = vmatmul.mubr.bf16.gmra.mrb[40].mxu1 %v860_v46 }
 0x4bb   :  { %v1565_v49 = vpop.f32.mrb[44].mxu0  ;;  %1643 = vmatpush3.bf16.msra.mxu1 %v1691_v20 }
 0x4bc   :  { %v840_v50 = vpop.f32.mrb[45].mxu0  ;;  %1636 = vmatprep.subr.bf16.mxu1 %v1692_v21 }
 0x4bd   :  { %v1566_v51 = vpop.f32.mrb[46].mxu0 }
 0x4be   :  { %v862_v52 = vpack.c.bf16 %v1566_v51, %v1565_v49  ;;  %v843_v53 = vpop.f32.mrb[47].mxu0 }
 0x4bf   :  { %v861_v54 = vpack.c.bf16 %v843_v53, %v840_v50  ;;  %1644 = vmatpush3.bf16.msra.mxu1 %v1692_v21  ;;  %v1286_v50 = vld [vmem:[%s2003_s9] ss:$0 sm:$0xff] }
 0x4c0   :  { %1637 = vmatprep.subr.bf16.mxu1 %v1693_v56 }
 0x4c1   :  { %1595 = vmatprep.mubr.bf16.mxu1 %v861_v54 }
 0x4c2   :  { %1596 = vmatmul.mubr.bf16.gmra.mrb[44].mxu1 %v862_v52 }
 0x4c3   :  { %1645 = vmatpush3.bf16.msra.mxu1 %v1693_v56 }
 0x4c4   :  { %1638 = vmatprep.subr.bf16.mxu1 %v1694_v55 }
 0x4c7   :  { %1646 = vmatpush3.bf16.msra.mxu1 %v1694_v55 }
 0x57d   :  { %v1585_v58 = vpop.f32.mrb[32].mxu1 }
 0x57e   :  { %v977_v59 = vadd.f32 %v1585_v58, %v1277_v57  ;;  %v968_v60 = vpop.f32.mrb[33].mxu1 }
 0x57f   :  { %v969_v61 = vadd.f32 %v1277_v57, %v968_v60  ;;  %v1586_v62 = vpop.f32.mrb[34].mxu1 }
 0x580   :  { %v980_v63 = vadd.f32 %v1586_v62, %v1277_v57  ;;  %v971_v0 = vpop.f32.mrb[35].mxu1  ;;  %v1033_v2 = vmax.f32 %v977_v59, 0.0 }
 0x581   :  { %v972_v1 = vadd.f32 %v1277_v57, %v971_v0  ;;  %v1031_v4 = vmax.f32 %v969_v61, 0.0 }
 0x582   :  { %v1034_v3 = vmax.f32 %v980_v63, 0.0 }
 0x583   :  { %v1032_v5 = vmax.f32 %v972_v1, 0.0 }
 0x584   :  { %v1048_v6 = vpack.c.bf16 %v1034_v3, %v1033_v2 }
 0x585   :  { %v1047_v7 = vpack.c.bf16 %v1032_v5, %v1031_v4  ;;  %v1589_v8 = vpop.f32.mrb[36].mxu1 }
 0x586   :  { %v993_v9 = vadd.f32 %v1589_v8, %v1277_v57  ;;  %v984_v10 = vpop.f32.mrb[37].mxu1 }
 0x587   :  { %v985_v11 = vadd.f32 %v1277_v57, %v984_v10  ;;  %v1590_v12 = vpop.f32.mrb[38].mxu1  ;;  %1615 = vmatprep.mubr.bf16.mxu0 %v1047_v7 }
 0x588   :  { %v996_v13 = vadd.f32 %v1590_v12, %v1277_v57  ;;  %v987_v16 = vpop.f32.mrb[39].mxu1  ;;  %1616 = vmatmul.mubr.bf16.vlgmr.msra.gmra.mrb[48].mxu0 %v1048_v6  ;;  %v1037_v23 = vmax.f32 %v993_v9, 0.0 }
 0x589   :  { %v988_v17 = vadd.f32 %v1277_v57, %v987_v16  ;;  %v1035_v25 = vmax.f32 %v985_v11, 0.0 }
 0x58a   :  { %v1038_v24 = vmax.f32 %v996_v13, 0.0 }
 0x58b   :  { %v1036_v26 = vmax.f32 %v988_v17, 0.0 }
 0x58c   :  { %v1050_v27 = vpack.c.bf16 %v1038_v24, %v1037_v23 }
 0x58d   :  { %v1049_v28 = vpack.c.bf16 %v1036_v26, %v1035_v25  ;;  %v1593_v29 = vpop.f32.mrb[40].mxu1 }
 0x58e   :  { %v1009_v30 = vadd.f32 %v1593_v29, %v1277_v57  ;;  %v1000_v31 = vpop.f32.mrb[41].mxu1 }
 0x58f   :  { %v1001_v14 = vadd.f32 %v1277_v57, %v1000_v31  ;;  %v1594_v15 = vpop.f32.mrb[42].mxu1  ;;  %1619 = vmatprep.mubr.bf16.mxu0 %v1049_v28 }
 0x590   :  { %v1012_v18 = vadd.f32 %v1594_v15, %v1277_v57  ;;  %v1003_v19 = vpop.f32.mrb[43].mxu1  ;;  %1620 = vmatmul.mubr.bf16.gmra.mrb[52].mxu0 %v1050_v27  ;;  %v1041_v21 = vmax.f32 %v1009_v30, 0.0 }
 0x591   :  { %v1004_v20 = vadd.f32 %v1277_v57, %v1003_v19  ;;  %v1039_v32 = vmax.f32 %v1001_v14, 0.0 }
 0x592   :  { %v1042_v22 = vmax.f32 %v1012_v18, 0.0 }
 0x593   :  { %v1040_v33 = vmax.f32 %v1004_v20, 0.0 }
 0x594   :  { %v1052_v34 = vpack.c.bf16 %v1042_v22, %v1041_v21 }
 0x595   :  { %v1051_v35 = vpack.c.bf16 %v1040_v33, %v1039_v32  ;;  %v1597_v36 = vpop.f32.mrb[44].mxu1 }
 0x596   :  { %v1025_v37 = vadd.f32 %v1597_v36, %v1277_v57  ;;  %v1016_v38 = vpop.f32.mrb[45].mxu1 }
 0x597   :  { %v1017_v39 = vadd.f32 %v1277_v57, %v1016_v38  ;;  %v1598_v40 = vpop.f32.mrb[46].mxu1  ;;  %1623 = vmatprep.mubr.bf16.mxu1 %v1051_v35 }
 0x598   :  { %v1028_v41 = vadd.f32 %v1598_v40, %v1277_v57  ;;  %v1019_v42 = vpop.f32.mrb[47].mxu1  ;;  %1624 = vmatmul.mubr.bf16.vlgmr.msra.gmra.mrb[48].mxu1 %v1052_v34  ;;  %v1045_v44 = vmax.f32 %v1025_v37, 0.0 }
 0x599   :  { %v1020_v43 = vadd.f32 %v1277_v57, %v1019_v42  ;;  %v1043_v46 = vmax.f32 %v1017_v39, 0.0 }
 0x59a   :  { %v1046_v45 = vmax.f32 %v1028_v41, 0.0 }
 0x59b   :  { %v1044_v47 = vmax.f32 %v1020_v43, 0.0 }
 0x59c   :  { %v1054_v48 = vpack.c.bf16 %v1046_v45, %v1045_v44 }
 0x59d   :  { %v1053_v49 = vpack.c.bf16 %v1044_v47, %v1043_v46 }
 0x59f   :  { %1627 = vmatprep.mubr.bf16.mxu1 %v1053_v49 }
 0x5a0   :  { %1628 = vmatmul.mubr.bf16.gmra.mrb[52].mxu1 %v1054_v48 }
 0x65b   :  { %v1617_v51 = vpop.f32.mrb[48].mxu0 }
 0x65c   :  { %v1169_v52 = vadd.f32 %v1617_v51, %v1286_v50  ;;  %v1160_v53 = vpop.f32.mrb[49].mxu0 }
 0x65d   :  { %v1161_v54 = vadd.f32 %v1286_v50, %v1160_v53  ;;  %v1618_v56 = vpop.f32.mrb[50].mxu0 }
 0x65e   :  { %1225 = vst [vmem:[%s2004_s10 + $0x10] sm:$0xff] %v1169_v52  ;;  %v1172_v55 = vadd.f32 %v1618_v56, %v1286_v50  ;;  %v1163_v57 = vpop.f32.mrb[51].mxu0 }
 0x65f   :  { %1223 = vst [vmem:[%s2004_s10] sm:$0xff] %v1161_v54  ;;  %v1164_v58 = vadd.f32 %v1286_v50, %v1163_v57 }
 0x660   :  { %1226 = vst [vmem:[%s2004_s10 + $0x18] sm:$0xff] %v1172_v55 }
 0x661   :  { %1224 = vst [vmem:[%s2004_s10 + $0x8] sm:$0xff] %v1164_v58 }
 0x663   :  { %v1621_v59 = vpop.f32.mrb[52].mxu0 }
 0x664   :  { %v1185_v60 = vadd.f32 %v1621_v59, %v1286_v50  ;;  %v1176_v61 = vpop.f32.mrb[53].mxu0 }
 0x665   :  { %v1177_v62 = vadd.f32 %v1286_v50, %v1176_v61  ;;  %v1622_v63 = vpop.f32.mrb[54].mxu0 }
 0x666   :  { %1229 = vst [vmem:[%s2004_s10 + $0x30] sm:$0xff] %v1185_v60  ;;  %v1188_v0 = vadd.f32 %v1622_v63, %v1286_v50  ;;  %v1179_v1 = vpop.f32.mrb[55].mxu0 }
 0x667   :  { %1227 = vst [vmem:[%s2004_s10 + $0x20] sm:$0xff] %v1177_v62  ;;  %v1180_v2 = vadd.f32 %v1286_v50, %v1179_v1 }
 0x668   :  { %1230 = vst [vmem:[%s2004_s10 + $0x38] sm:$0xff] %v1188_v0 }
 0x669   :  { %1228 = vst [vmem:[%s2004_s10 + $0x28] sm:$0xff] %v1180_v2 }
 0x66b   :  { %v1625_v3 = vpop.f32.mrb[48].mxu1 }
 0x66c   :  { %v1201_v4 = vadd.f32 %v1625_v3, %v1286_v50  ;;  %v1192_v5 = vpop.f32.mrb[49].mxu1 }
 0x66d   :  { %v1193_v6 = vadd.f32 %v1286_v50, %v1192_v5  ;;  %v1626_v7 = vpop.f32.mrb[50].mxu1 }
 0x66e   :  { %1233 = vst [vmem:[%s2004_s10 + $0x50] sm:$0xff] %v1201_v4  ;;  %v1204_v8 = vadd.f32 %v1626_v7, %v1286_v50  ;;  %v1195_v9 = vpop.f32.mrb[51].mxu1 }
 0x66f   :  { %1231 = vst [vmem:[%s2004_s10 + $0x40] sm:$0xff] %v1193_v6  ;;  %v1196_v10 = vadd.f32 %v1286_v50, %v1195_v9 }
 0x670   :  { %1234 = vst [vmem:[%s2004_s10 + $0x58] sm:$0xff] %v1204_v8 }
 0x671   :  { %1232 = vst [vmem:[%s2004_s10 + $0x48] sm:$0xff] %v1196_v10 }
 0x673   :  { %v1629_v11 = vpop.f32.mrb[52].mxu1 }
 0x674   :  { %v1217_v12 = vadd.f32 %v1629_v11, %v1286_v50  ;;  %v1208_v13 = vpop.f32.mrb[53].mxu1 }
 0x675   :  { %v1209_v16 = vadd.f32 %v1286_v50, %v1208_v13  ;;  %v1630_v17 = vpop.f32.mrb[54].mxu1 }
 0x676   :  { %1237 = vst [vmem:[%s2004_s10 + $0x70] sm:$0xff] %v1217_v12  ;;  %v1220_v23 = vadd.f32 %v1630_v17, %v1286_v50  ;;  %v1211_v24 = vpop.f32.mrb[55].mxu1 }
 0x677   :  { %1235 = vst [vmem:[%s2004_s10 + $0x60] sm:$0xff] %v1209_v16  ;;  %v1212_v25 = vadd.f32 %v1286_v50, %v1211_v24 }
 0x678   :  { %1238 = vst [vmem:[%s2004_s10 + $0x78] sm:$0xff] %v1220_v23 }
 0x679   :  { %1236 = vst [vmem:[%s2004_s10 + $0x68] sm:$0xff] %v1212_v25 }

</bundles_post_ra>
